<compile_context>
chip_gen: v7x
topology: tpu7x:2x2x1
jax: 0.10.0
libtpu: 0.0.40
codegen_flags: <defaults>
</compile_context>

<pallas_src>
import math
from functools import partial

import jax
import jax.numpy as jnp
import numpy as np
from jax.experimental import pallas as pl
from jax.experimental.pallas import tpu as pltpu

BN_EPS = 1e-5      # nn.BatchNorm1d default eps
L2_EPS = 1e-12     # F.normalize eps
CORR_EPS = 1e-9    # eps inside the sqrt of the correlation difference


# ----------------------------- Pallas kernel ------------------------------- #
def _adssa_kernel(x_ref, gamma_ref, bias_ref, out_ref,
                  sum_ref, sumsq_ref, acc_ref, *, total_b):
    # x_ref:     [M, TB, D]  batch tile of stacked modality features
    # gamma_ref: [1, D]      BatchNorm1d weight
    # bias_ref:  [1, D]      BatchNorm1d bias
    # out_ref:   [M, M]      pairwise correlation-difference scalars
    # sum_ref/sumsq_ref: [M, 1, D] BN statistic accumulators (VMEM scratch)
    # acc_ref:   [M, M]      pairwise squared-difference accumulator
    phase = pl.program_id(0)
    bt = pl.program_id(1)
    nbt = pl.num_programs(1)
    M, TB, D = x_ref.shape

    x = x_ref[...].astype(jnp.float32)                            # [M, TB, D]

    @pl.when((phase == 0) & (bt == 0))
    def _init():
        sum_ref[...] = jnp.zeros_like(sum_ref)
        sumsq_ref[...] = jnp.zeros_like(sumsq_ref)
        acc_ref[...] = jnp.zeros_like(acc_ref)

    # ---------------- phase 0: BatchNorm batch statistics -----------------
    @pl.when(phase == 0)
    def _stats():
        sum_ref[...] += jnp.sum(x, axis=1, keepdims=True)         # [M, 1, D]
        sumsq_ref[...] += jnp.sum(x * x, axis=1, keepdims=True)   # [M, 1, D]

    # ---------------- phase 1: normalize + pairwise accumulation ----------
    @pl.when(phase == 1)
    def _main():
        inv_b = 1.0 / float(total_b)
        mean = sum_ref[...] * inv_b                               # [M, 1, D]
        var = jnp.maximum(sumsq_ref[...] * inv_b - mean * mean, 0.0)
        # rsqrt keeps the heavy op on the EUP slot; only multiplies hit the VALU.
        inv_std = jax.lax.rsqrt(var + BN_EPS)                     # [M, 1, D]
        g = gamma_ref[...].reshape(1, 1, D)
        b = bias_ref[...].reshape(1, 1, D)
        xb = (x - mean) * (inv_std * g) + b                       # [M, TB, D]

        # F.normalize(p=2, dim=1): x / max(||x||, eps) == x * rsqrt(max(||x||^2, eps^2))
        nrm_sq = jnp.sum(xb * xb, axis=2, keepdims=True)          # [M, TB, 1]
        xn = xb * jax.lax.rsqrt(jnp.maximum(nrm_sq, L2_EPS * L2_EPS))

        # Vectorized pairwise Gram identity:
        #   ||a a^T - c c^T||_F^2 = (a.a)^2 + (c.c)^2 - 2 (a.c)^2
        # cross[m, n, b] = xn_m[b] . xn_n[b];   diag(cross2) gives the (a.a)^2 sums.
        prod = xn[:, None, :, :] * xn[None, :, :, :]              # [M, M, TB, D]
        cross = jnp.sum(prod, axis=-1)                            # [M, M, TB]
        cross2 = jnp.sum(cross * cross, axis=-1)                  # [M, M]

        row_ids = jax.lax.broadcasted_iota(jnp.int32, (M, M), 0)
        col_ids = jax.lax.broadcasted_iota(jnp.int32, (M, M), 1)
        diag_only = jnp.where(row_ids == col_ids, cross2, 0.0)
        row_term = jnp.sum(diag_only, axis=1, keepdims=True)      # [M, 1] = cross2[m, m]
        col_term = jnp.sum(diag_only, axis=0, keepdims=True)      # [1, M] = cross2[n, n]
        acc_ref[...] += (row_term + col_term) - 2.0 * cross2

    @pl.when((phase == 1) & (bt == nbt - 1))
    def _finalize():
        # clamp guards tiny negative fp cancellation on the diagonal
        out_ref[...] = jnp.sqrt(CORR_EPS + jnp.maximum(acc_ref[...], 0.0))


def _pick_batch_tile(M, B, D, budget_bytes=8 << 20):
    """Largest batch tile (multiple of 8 that divides B, or B itself) keeping the
    [M, M, TB, D] f32 intermediate under budget — safe for v7x's smaller VMEM."""
    per_b = max(M * M * D * 4, 1)
    max_tb = max(8, budget_bytes // per_b)
    if B <= max_tb:
        return B
    best = None
    t = 8
    while t <= max_tb:
        if B % t == 0:
            best = t
        t += 8
    return best if best is not None else B


def adssa_corr_diff(x_stacked, gamma, bias):
    """x_stacked: [M, B, D] (f32 or bf16), gamma/bias: [1, D] f32 -> [M, M] f32.

    bf16 inputs are supported (cast to f32 inside the kernel), halving the
    HBM->VMEM DMA bytes if the caller keeps features in bf16.
    """
    M, B, D = x_stacked.shape
    tb = _pick_batch_tile(M, B, D)
    nbt = B // tb
    kernel = partial(_adssa_kernel, total_b=B)
    return pl.pallas_call(
        kernel,
        out_shape=jax.ShapeDtypeStruct((M, M), jnp.float32),
        grid=(2, nbt),                       # (phase, batch tile)
        in_specs=[
            pl.BlockSpec((M, tb, D), lambda p, i: (0, i, 0)),
            pl.BlockSpec((1, D), lambda p, i: (0, 0)),
            pl.BlockSpec((1, D), lambda p, i: (0, 0)),
        ],
        out_specs=pl.BlockSpec((M, M), lambda p, i: (0, 0)),
        scratch_shapes=[
            pltpu.VMEM((M, 1, D), jnp.float32),   # sum_x
            pltpu.VMEM((M, 1, D), jnp.float32),   # sum_x^2
            pltpu.VMEM((M, M), jnp.float32),      # pairwise accumulator
        ],
        # Both axes carry accumulator state -> "arbitrary".
        # TODO(synk): on v7x a core-parallel batch split (per-core partial [M,M]
        # accumulators merged in a final step) would use the second TensorCore.
        compiler_params=pltpu.CompilerParams(
            dimension_semantics=("arbitrary", "arbitrary"),
            vmem_limit_bytes=32 << 20,
        ),
    )(x_stacked, gamma, bias)


# ------------------------------ host-side glue ------------------------------ #
def _regularizer(loss1, loss2, beta=2.0, thresold=1e-05, method='exp'):
    # scalar python math, identical to the PyTorch reference
    d = loss1 - loss2
    sig = lambda z: 1.0 / (1.0 + math.exp(-z))
    if method == 'exp':
        return beta * math.exp(d) - 1 if d > thresold else 0.0
    elif method == 'switch':
        return d * sig(beta * d) if d > thresold else 0.0
    elif method == 'identity':
        return beta * d if d > thresold else 0.0
    elif method == 'multiply':
        return beta * math.exp(d) - 1 if d > thresold else 0.0
    elif method == 'exp_in':
        return math.exp(beta * d) - 1 if d > thresold else 0.0
    elif method == 'bi_exp':
        return beta * math.exp(d) - 1
    elif method == 'bi_switch':
        return d * sig(beta * d)
    elif method == 'bi_exp_in':
        return 2 * math.exp(beta * d) - 1 if d > thresold else 0.0
    elif method == 'bibi_exp_in':
        return 2 * math.exp(beta * d) - 1
    elif method == 'log':
        return math.log(beta * d + 1) if d > thresold else 0.0
    raise ValueError(method)


class ADSSALoss:
    def __init__(self, requirements, feature_dims, beta=2.0, lamda=0.1,
                 threshold=1e-5, reg_method='exp'):
        self.requirments = list(requirements)
        self.beta = beta
        self.lamda = lamda
        self.threshold = threshold
        self.reg_method = reg_method
        # nn.BatchNorm1d(feature_dims) parameters, deterministic init (weight=1, bias=0)
        self.bn_gamma = jnp.ones((1, feature_dims), jnp.float32)
        self.bn_bias = jnp.zeros((1, feature_dims), jnp.float32)

    def __call__(self, dict_loss, dict_x):
        reqs = self.requirments
        M = len(reqs)
        x_stacked = jnp.stack([jnp.asarray(dict_x[r]) for r in reqs], axis=0)
        corr_diff = adssa_corr_diff(x_stacked, self.bn_gamma, self.bn_bias)  # [M, M]

        # TODO(synk): focal weights depend on math.exp of scalar python losses
        # (as in the reference); they stay host-side. The combination with
        # corr_diff is one device-side weighted reduction (no M^2 scalar indexing).
        focal = np.zeros((M, M), np.float32)
        for mi, m in enumerate(reqs):
            for ni, n in enumerate(reqs):
                focal[mi, ni] = _regularizer(dict_loss[n], dict_loss[m], self.beta,
                                             self.threshold, self.reg_method)
        ssa_vec = jnp.sum(jnp.asarray(focal) * corr_diff, axis=1)            # [M]

        dict_ssa_loss = {m: ssa_vec[mi] for mi, m in enumerate(reqs)}
        total_loss = {'ssaloss': dict_ssa_loss, 'total_loss': {}}
        for mi, r in enumerate(reqs):
            total_loss['total_loss'][r] = dict_loss[r] + self.lamda * ssa_vec[mi]
        return total_loss


# ------------------------------ reference check ----------------------------- #
def _reference_corr_diff(x_stacked):
    """Pure-JAX reference following the literal PyTorch op sequence."""
    x = x_stacked.astype(jnp.float32)
    mean = jnp.mean(x, axis=1, keepdims=True)
    var = jnp.mean((x - mean) ** 2, axis=1, keepdims=True)
    xb = (x - mean) / jnp.sqrt(var + BN_EPS)           # gamma=1, bias=0
    nrm = jnp.sqrt(jnp.sum(xb * xb, axis=2, keepdims=True))
    xn = xb / jnp.maximum(nrm, L2_EPS)
    corr = jnp.einsum('mbi,mbj->mbij', xn, xn)          # [M, B, D, D]
    diff = corr[:, None] - corr[None, :]                # [M, M, B, D, D]
    return jnp.sqrt(CORR_EPS + jnp.sum(diff ** 2, axis=(2, 3, 4)))


if __name__ == "__main__":
    requirements = ['rgb', 'depth', 'flow']
    B, D = 8, 32

    key = jax.random.PRNGKey(0)
    keys = jax.random.split(key, len(requirements))
    dict_x = {r: jax.random.normal(k, (B, D), dtype=jnp.float32)
              for r, k in zip(requirements, keys)}
    dict_loss = {'rgb': 1.2, 'depth': 0.8, 'flow': 1.5}

    module = ADSSALoss(requirements, feature_dims=D, beta=2.0, lamda=0.1,
                       threshold=1e-5, reg_method='exp')

    out = module(dict_loss, dict_x)
    flat = [out['ssaloss'][r] for r in requirements] + \
           [out['total_loss'][r] for r in requirements]
    jax.block_until_ready(flat)

    # sanity-check the Pallas hot path against the pure-JAX reference
    x_stacked = jnp.stack([dict_x[r] for r in requirements], axis=0)
    got = adssa_corr_diff(x_stacked, module.bn_gamma, module.bn_bias)
    want = _reference_corr_diff(x_stacked)
    np.testing.assert_allclose(np.asarray(got), np.asarray(want),
                               rtol=1e-4, atol=1e-4)

    print("KERNEL_OK")
</pallas_src>

<mosaic_0001>
module attributes {stable_mosaic.version = 11 : i64} {
  func.func @_adssa_kernel(%arg0: i32, %arg1: i32, %arg2: memref<3x8x32xf32, #tpu.memory_space<vmem>>, %arg3: memref<1x32xf32, #tpu.memory_space<vmem>>, %arg4: memref<1x32xf32, #tpu.memory_space<vmem>>, %arg5: memref<3x3xf32, #tpu.memory_space<vmem>>, %arg6: memref<3x1x32xf32, #tpu.memory_space<vmem>>, %arg7: memref<3x1x32xf32, #tpu.memory_space<vmem>>, %arg8: memref<3x3xf32, #tpu.memory_space<vmem>>) attributes {dimension_semantics = [#tpu.dimension_semantics<arbitrary>, #tpu.dimension_semantics<arbitrary>], iteration_bounds = array<i64: 2, 1>, scalar_prefetch = 0 : i64, scratch_operands = 3 : i64, tpu.core_type = #tpu.core_type<tc>, window_params = [{transform_indices = @transform_0, window_bounds = array<i64: 3, 8, 32>}, {pipeline_mode = #tpu.pipeline_mode<synchronous>, transform_indices = @transform_1, window_bounds = array<i64: 1, 32>}, {pipeline_mode = #tpu.pipeline_mode<synchronous>, transform_indices = @transform_2, window_bounds = array<i64: 1, 32>}, {pipeline_mode = #tpu.pipeline_mode<synchronous>, transform_indices = @transform_3, window_bounds = array<i64: 3, 3>}]} {
    %c0 = arith.constant 0 : index
    %c0_0 = arith.constant 0 : index
    %c0_1 = arith.constant 0 : index
    %0 = vector.load %arg2[%c0, %c0_0, %c0_1] : memref<3x8x32xf32, #tpu.memory_space<vmem>>, vector<3x8x32xf32>
    %c0_i32 = arith.constant 0 : i32
    %1 = arith.cmpi eq, %arg0, %c0_i32 : i32
    %c0_i32_2 = arith.constant 0 : i32
    %2 = arith.cmpi eq, %arg1, %c0_i32_2 : i32
    %3 = arith.andi %1, %2 : i1
    %4 = arith.extui %3 : i1 to i32
    %c0_i32_3 = arith.constant 0 : i32
    %5 = arith.cmpi ne, %4, %c0_i32_3 : i32
    scf.if %5 {
      %cst = arith.constant 0.000000e+00 : f32
      %17 = vector.broadcast %cst : f32 to vector<3x1x32xf32>
      %c0_10 = arith.constant 0 : index
      %c0_11 = arith.constant 0 : index
      %c0_12 = arith.constant 0 : index
      %18 = vector.load %arg6[%c0_10, %c0_11, %c0_12] : memref<3x1x32xf32, #tpu.memory_space<vmem>>, vector<3x1x32xf32>
      tpu.vector_store %arg6[%c0_10, %c0_11, %c0_12], %17 {strides = array<i32>} : memref<3x1x32xf32, #tpu.memory_space<vmem>>, vector<3x1x32xf32>,
      %cst_13 = arith.constant 0.000000e+00 : f32
      %19 = vector.broadcast %cst_13 : f32 to vector<3x1x32xf32>
      %c0_14 = arith.constant 0 : index
      %c0_15 = arith.constant 0 : index
      %c0_16 = arith.constant 0 : index
      %20 = vector.load %arg7[%c0_14, %c0_15, %c0_16] : memref<3x1x32xf32, #tpu.memory_space<vmem>>, vector<3x1x32xf32>
      tpu.vector_store %arg7[%c0_14, %c0_15, %c0_16], %19 {strides = array<i32>} : memref<3x1x32xf32, #tpu.memory_space<vmem>>, vector<3x1x32xf32>,
      %cst_17 = arith.constant 0.000000e+00 : f32
      %21 = vector.broadcast %cst_17 : f32 to vector<3x3xf32>
      %c0_18 = arith.constant 0 : index
      %c0_19 = arith.constant 0 : index
      %22 = vector.load %arg8[%c0_18, %c0_19] : memref<3x3xf32, #tpu.memory_space<vmem>>, vector<3x3xf32>
      tpu.vector_store %arg8[%c0_18, %c0_19], %21 {strides = array<i32>} : memref<3x3xf32, #tpu.memory_space<vmem>>, vector<3x3xf32>,
    } else {
    }
    %c0_i32_4 = arith.constant 0 : i32
    %6 = arith.cmpi eq, %arg0, %c0_i32_4 : i32
    %7 = arith.extui %6 : i1 to i32
    %c0_i32_5 = arith.constant 0 : i32
    %8 = arith.cmpi ne, %7, %c0_i32_5 : i32
    scf.if %8 {
      %c0_10 = arith.constant 0 : index
      %c0_11 = arith.constant 0 : index
      %c0_12 = arith.constant 0 : index
      %17 = vector.load %arg6[%c0_10, %c0_11, %c0_12] : memref<3x1x32xf32, #tpu.memory_space<vmem>>, vector<3x1x32xf32>
      %cst = arith.constant dense<0.000000e+00> : vector<3x32xf32>
      %18 = vector.multi_reduction <add>, %0, %cst [1] : vector<3x8x32xf32> to vector<3x32xf32>
      %19 = vector.shape_cast %18 : vector<3x32xf32> to vector<3x1x32xf32>
      %20 = arith.addf %17, %19 : vector<3x1x32xf32>
      %c0_13 = arith.constant 0 : index
      %c0_14 = arith.constant 0 : index
      %c0_15 = arith.constant 0 : index
      %21 = vector.load %arg6[%c0_13, %c0_14, %c0_15] : memref<3x1x32xf32, #tpu.memory_space<vmem>>, vector<3x1x32xf32>
      tpu.vector_store %arg6[%c0_13, %c0_14, %c0_15], %20 {strides = array<i32>} : memref<3x1x32xf32, #tpu.memory_space<vmem>>, vector<3x1x32xf32>,
      %c0_16 = arith.constant 0 : index
      %c0_17 = arith.constant 0 : index
      %c0_18 = arith.constant 0 : index
      %22 = vector.load %arg7[%c0_16, %c0_17, %c0_18] : memref<3x1x32xf32, #tpu.memory_space<vmem>>, vector<3x1x32xf32>
      %23 = arith.mulf %0, %0 : vector<3x8x32xf32>
      %cst_19 = arith.constant dense<0.000000e+00> : vector<3x32xf32>
      %24 = vector.multi_reduction <add>, %23, %cst_19 [1] : vector<3x8x32xf32> to vector<3x32xf32>
      %25 = vector.shape_cast %24 : vector<3x32xf32> to vector<3x1x32xf32>
      %26 = arith.addf %22, %25 : vector<3x1x32xf32>
      %c0_20 = arith.constant 0 : index
      %c0_21 = arith.constant 0 : index
      %c0_22 = arith.constant 0 : index
      %27 = vector.load %arg7[%c0_20, %c0_21, %c0_22] : memref<3x1x32xf32, #tpu.memory_space<vmem>>, vector<3x1x32xf32>
      tpu.vector_store %arg7[%c0_20, %c0_21, %c0_22], %26 {strides = array<i32>} : memref<3x1x32xf32, #tpu.memory_space<vmem>>, vector<3x1x32xf32>,
    } else {
    }
    %c1_i32 = arith.constant 1 : i32
    %9 = arith.cmpi eq, %arg0, %c1_i32 : i32
    %10 = arith.extui %9 : i1 to i32
    %c0_i32_6 = arith.constant 0 : i32
    %11 = arith.cmpi ne, %10, %c0_i32_6 : i32
    scf.if %11 {
      %c0_10 = arith.constant 0 : index
      %c0_11 = arith.constant 0 : index
      %c0_12 = arith.constant 0 : index
      %17 = vector.load %arg6[%c0_10, %c0_11, %c0_12] : memref<3x1x32xf32, #tpu.memory_space<vmem>>, vector<3x1x32xf32>
      %cst = arith.constant 1.250000e-01 : f32
      %18 = vector.broadcast %cst : f32 to vector<3x1x32xf32>
      %19 = arith.mulf %17, %18 : vector<3x1x32xf32>
      %c0_13 = arith.constant 0 : index
      %c0_14 = arith.constant 0 : index
      %c0_15 = arith.constant 0 : index
      %20 = vector.load %arg7[%c0_13, %c0_14, %c0_15] : memref<3x1x32xf32, #tpu.memory_space<vmem>>, vector<3x1x32xf32>
      %cst_16 = arith.constant 1.250000e-01 : f32
      %21 = vector.broadcast %cst_16 : f32 to vector<3x1x32xf32>
      %22 = arith.mulf %20, %21 : vector<3x1x32xf32>
      %23 = arith.mulf %19, %19 : vector<3x1x32xf32>
      %24 = arith.subf %22, %23 : vector<3x1x32xf32>
      %cst_17 = arith.constant 0.000000e+00 : f32
      %25 = vector.broadcast %cst_17 : f32 to vector<3x1x32xf32>
      %26 = arith.maximumf %24, %25 : vector<3x1x32xf32>
      %cst_18 = arith.constant 9.99999974E-6 : f32
      %27 = vector.broadcast %cst_18 : f32 to vector<3x1x32xf32>
      %28 = arith.addf %26, %27 : vector<3x1x32xf32>
      %29 = math.rsqrt %28 : vector<3x1x32xf32>
      %c0_19 = arith.constant 0 : index
      %c0_20 = arith.constant 0 : index
      %30 = vector.load %arg3[%c0_19, %c0_20] : memref<1x32xf32, #tpu.memory_space<vmem>>, vector<1x32xf32>
      %31 = vector.shape_cast %30 : vector<1x32xf32> to vector<1x1x32xf32>
      %c0_21 = arith.constant 0 : index
      %c0_22 = arith.constant 0 : index
      %32 = vector.load %arg4[%c0_21, %c0_22] : memref<1x32xf32, #tpu.memory_space<vmem>>, vector<1x32xf32>
      %33 = vector.shape_cast %32 : vector<1x32xf32> to vector<1x1x32xf32>
      %34 = vector.broadcast %19 : vector<3x1x32xf32> to vector<3x8x32xf32>
      %35 = arith.subf %0, %34 : vector<3x8x32xf32>
      %36 = vector.broadcast %31 : vector<1x1x32xf32> to vector<3x1x32xf32>
      %37 = arith.mulf %29, %36 : vector<3x1x32xf32>
      %38 = vector.broadcast %37 : vector<3x1x32xf32> to vector<3x8x32xf32>
      %39 = arith.mulf %35, %38 : vector<3x8x32xf32>
      %40 = vector.broadcast %33 : vector<1x1x32xf32> to vector<3x8x32xf32>
      %41 = arith.addf %39, %40 : vector<3x8x32xf32>
      %42 = arith.mulf %41, %41 : vector<3x8x32xf32>
      %cst_23 = arith.constant dense<0.000000e+00> : vector<3x8xf32>
      %43 = vector.multi_reduction <add>, %42, %cst_23 [2] : vector<3x8x32xf32> to vector<3x8xf32>
      %44 = vector.shape_cast %43 : vector<3x8xf32> to vector<3x8x1xf32>
      %cst_24 = arith.constant 1.000000e-24 : f32
      %45 = vector.broadcast %cst_24 : f32 to vector<3x8x1xf32>
      %46 = arith.maximumf %44, %45 : vector<3x8x1xf32>
      %47 = math.rsqrt %46 : vector<3x8x1xf32>
      %48 = vector.broadcast %47 : vector<3x8x1xf32> to vector<3x8x32xf32>
      %49 = arith.mulf %41, %48 : vector<3x8x32xf32>
      %50 = vector.shape_cast %49 : vector<3x8x32xf32> to vector<3x1x8x32xf32>
      %51 = vector.shape_cast %49 : vector<3x8x32xf32> to vector<1x3x8x32xf32>
      %52 = vector.broadcast %50 : vector<3x1x8x32xf32> to vector<3x3x8x32xf32>
      %53 = vector.broadcast %51 : vector<1x3x8x32xf32> to vector<3x3x8x32xf32>
      %54 = arith.mulf %52, %53 : vector<3x3x8x32xf32>
      %cst_25 = arith.constant dense<0.000000e+00> : vector<3x3x8xf32>
      %55 = vector.multi_reduction <add>, %54, %cst_25 [3] : vector<3x3x8x32xf32> to vector<3x3x8xf32>
      %56 = arith.mulf %55, %55 : vector<3x3x8xf32>
      %cst_26 = arith.constant dense<0.000000e+00> : vector<3x3xf32>
      %57 = vector.multi_reduction <add>, %56, %cst_26 [2] : vector<3x3x8xf32> to vector<3x3xf32>
      %58 = tpu.iota {dimensions = array<i32: 0>} : vector<3x3xi32>
      %59 = tpu.iota {dimensions = array<i32: 1>} : vector<3x3xi32>
      %60 = arith.cmpi eq, %58, %59 : vector<3x3xi32>
      %cst_27 = arith.constant 0.000000e+00 : f32
      %61 = vector.broadcast %cst_27 : f32 to vector<3x3xf32>
      %62 = arith.select %60, %57, %61 : vector<3x3xi1>, vector<3x3xf32>
      %cst_28 = arith.constant dense<0.000000e+00> : vector<3xf32>
      %63 = vector.multi_reduction <add>, %62, %cst_28 [1] : vector<3x3xf32> to vector<3xf32>
      %64 = vector.shape_cast %63 : vector<3xf32> to vector<3x1xf32>
      %cst_29 = arith.constant dense<0.000000e+00> : vector<3xf32>
      %65 = vector.multi_reduction <add>, %62, %cst_29 [0] : vector<3x3xf32> to vector<3xf32>
      %66 = vector.shape_cast %65 : vector<3xf32> to vector<1x3xf32>
      %c0_30 = arith.constant 0 : index
      %c0_31 = arith.constant 0 : index
      %67 = vector.load %arg8[%c0_30, %c0_31] : memref<3x3xf32, #tpu.memory_space<vmem>>, vector<3x3xf32>
      %68 = vector.broadcast %64 : vector<3x1xf32> to vector<3x3xf32>
      %69 = vector.broadcast %66 : vector<1x3xf32> to vector<3x3xf32>
      %70 = arith.addf %68, %69 : vector<3x3xf32>
      %cst_32 = arith.constant 2.000000e+00 : f32
      %71 = vector.broadcast %cst_32 : f32 to vector<3x3xf32>
      %72 = arith.mulf %71, %57 : vector<3x3xf32>
      %73 = arith.subf %70, %72 : vector<3x3xf32>
      %74 = arith.addf %67, %73 : vector<3x3xf32>
      %c0_33 = arith.constant 0 : index
      %c0_34 = arith.constant 0 : index
      %75 = vector.load %arg8[%c0_33, %c0_34] : memref<3x3xf32, #tpu.memory_space<vmem>>, vector<3x3xf32>
      tpu.vector_store %arg8[%c0_33, %c0_34], %74 {strides = array<i32>} : memref<3x3xf32, #tpu.memory_space<vmem>>, vector<3x3xf32>,
    } else {
    }
    %c1_i32_7 = arith.constant 1 : i32
    %12 = arith.cmpi eq, %arg0, %c1_i32_7 : i32
    %c0_i32_8 = arith.constant 0 : i32
    %13 = arith.cmpi eq, %arg1, %c0_i32_8 : i32
    %14 = arith.andi %12, %13 : i1
    %15 = arith.extui %14 : i1 to i32
    %c0_i32_9 = arith.constant 0 : i32
    %16 = arith.cmpi ne, %15, %c0_i32_9 : i32
    scf.if %16 {
      %c0_10 = arith.constant 0 : index
      %c0_11 = arith.constant 0 : index
      %17 = vector.load %arg8[%c0_10, %c0_11] : memref<3x3xf32, #tpu.memory_space<vmem>>, vector<3x3xf32>
      %cst = arith.constant 0.000000e+00 : f32
      %18 = vector.broadcast %cst : f32 to vector<3x3xf32>
      %19 = arith.maximumf %17, %18 : vector<3x3xf32>
      %cst_12 = arith.constant 9.99999971E-10 : f32
      %20 = vector.broadcast %cst_12 : f32 to vector<3x3xf32>
      %21 = arith.addf %20, %19 : vector<3x3xf32>
      %22 = math.sqrt %21 : vector<3x3xf32>
      %c0_13 = arith.constant 0 : index
      %c0_14 = arith.constant 0 : index
      %23 = vector.load %arg5[%c0_13, %c0_14] : memref<3x3xf32, #tpu.memory_space<vmem>>, vector<3x3xf32>
      tpu.vector_store %arg5[%c0_13, %c0_14], %22 {strides = array<i32>} : memref<3x3xf32, #tpu.memory_space<vmem>>, vector<3x3xf32>,
    } else {
    }
    return
  }
  func.func @transform_0(%arg0: i32, %arg1: i32) -> (i32, i32, i32) {
    %c0_i32 = arith.constant 0 : i32
    %c0_i32_0 = arith.constant 0 : i32
    %c0_i32_1 = arith.constant 0 : i32
    return %c0_i32, %arg1, %c0_i32_0 : i32, i32, i32
  }
  func.func @transform_1(%arg0: i32, %arg1: i32) -> (i32, i32) {
    %c0_i32 = arith.constant 0 : i32
    %c0_i32_0 = arith.constant 0 : i32
    %c0_i32_1 = arith.constant 0 : i32
    return %c0_i32, %c0_i32_0 : i32, i32
  }
  func.func @transform_2(%arg0: i32, %arg1: i32) -> (i32, i32) {
    %c0_i32 = arith.constant 0 : i32
    %c0_i32_0 = arith.constant 0 : i32
    %c0_i32_1 = arith.constant 0 : i32
    return %c0_i32, %c0_i32_0 : i32, i32
  }
  func.func @transform_3(%arg0: i32, %arg1: i32) -> (i32, i32) {
    %c0_i32 = arith.constant 0 : i32
    %c0_i32_0 = arith.constant 0 : i32
    %c0_i32_1 = arith.constant 0 : i32
    return %c0_i32, %c0_i32_0 : i32, i32
  }
}

</mosaic_0001>

<bundles_post_ra>
// kernel: tpu_custom_call.1
= control target key start
LH: loop header
LB: loop body
LE: loop exit
PB: predicated region body
PF: predicated region fallthrough
CT: control target
= control target key end

     0   :  { %8 = vsyncpa [#allocation6], 0  ;;  %s934_s0 = inlined_call_operand.hbm [shape: f32[3,8,32], index: 0, kind: input, shape index: {}]   ;;  %s935_s1 = inlined_call_operand.vmem [shape: f32[1,32], index: 1, kind: input, shape index: {}]   ;;  %s936_s2 = inlined_call_operand.vmem [shape: f32[1,32], index: 2, kind: input, shape index: {}]   ;;  %s937_s3 = inlined_call_operand.hbm [shape: f32[3,3], index: 3, kind: output, shape index: {}]  }
   0x1   :  { %9 = vsyncpa [#allocation7], 0  ;;  %s766_s12 = smov 0   ;;  %s768_s13 = smov 0  }
   0x2   :  { %s770_s14 = smov 0  }
   0x3 LB: > { %s580_s15 = sadd.s32 4294967295, %s739_s14   ;;  %s27_s16 = sadd.s32 1, %s735_s13  ;;  %s739_s14 = sphi %s770_s14, %s15_s14   ;;  %s735_s13 = sphi %s768_s13, %s948_s13   ;;  %s731_s12 = sphi %s766_s12, %s947_s12  }
   0x4   : > { %p29_p0 = scmp.ge.s32.totalorder %s27_s16, 2  ;;  %p581_p1 = scmp.ge.s32.totalorder %s739_s14, 1 }
   0x5   : > { %p121_p2 = scmp.lt.s32.totalorder %s739_s14, 3  ;;  %p793_p4 = scmp.eq.s32.totalorder %s580_s15, 0 }
   0x6   : > { %s950_s16 = smov (%p29_p0, %s27_s16), 0  ;;  %s741_s19 = smov [#allocation5]  }
   0x7   : > { %p787_p3 = pnand %p581_p1, %p121_p2  ;;  %s135_s20 = sshll.u32 %s741_s19, 4  ;;  %s136_s20 = int_to_ptr.vmem [resolvable:$true] %s135_s20 }
   0x8   : > { %s942_s18 = scalar_select %p793_p4, 1, 0 }
   0x9   : > { %s941_s17 = scalar_select %p787_p3, 1, 0 }
   0xa   : > { %p604_p5 = pneg %p787_p3  ;;  %s655_s24 = scalar_lea.hbm %s934_s0, 384 }
   0xb   : > { %p656_p7 = scmp.ne.s32.totalorder %s934_s0, %s655_s24  ;;  %p662_p11 = scmp.lt.u32.totalorder %s655_s24, %s934_s0 }
   0xc   : > { %p801_p6 = pnand %p793_p4, %p604_p5 }
   0xe   : > { %p657_p8 = pneg %p801_p6 }
  0x10   : > { %p658_p9 = pnand %p657_p8, %p656_p7 }
  0x12   : > { %p659_p10 = pneg %p658_p9 }
  0x14   : > { %p664_p12 = pnand %p662_p11, %p659_p10 }
  0x16   : > { %667 = shalt.err (!%p664_p12)
}
  0x17   : > { %s668_s29 = scalar_lea.vmem %s136_s20, 384  ;;  %p676_p2 = scmp.lt.s32.totalorder %s136_s20, %s136_s20 }
  0x18   : > { %p669_p13 = scmp.ne.s32.totalorder %s136_s20, %s668_s29  ;;  %p677_p5 = scmp.lt.s32.totalorder %s668_s29, %s668_s29 }
  0x1a   : > { %p671_p0 = pnand %p669_p13, %p657_p8  ;;  %p678_p4 = por %p677_p5, %p676_p2 }
  0x1c   : > { %p672_p1 = pneg %p671_p0 }
  0x1e   : > { %p679_p3 = pnand %p678_p4, %p672_p1 }
  0x20   : > { %682 = shalt.err (!%p679_p3)
}
  0x21   : > { %s742_s30 = smov 128   ;;  %s743_s4 = smov 8  }
  0x22   : > { %607 = dma.hbm_to_vmem [thread:$0]  (!%p801_p6), %s934_s0, 384, %s136_s20, [#allocation6], %s742_s30, %s742_s30, %s743_s4  }
  0x23   : > { %p944_p7 = scmp.ne.s32.totalorder %s941_s17, 0 }
  0x24   : > { %p945_p9 = scmp.ne.s32.totalorder (!%p944_p7), %s942_s18, 0 }
  0x25   : > { %157 = sbr.rel (%p944_p7) target bundleno = 781 (0x30d), region = 32 }
  0x2c   : > { %722 = dma.done.wait (%p945_p9), [#allocation6], 384  }
  0x2d   : > { %724 = vsyncadd (%p945_p9), [#allocation6], 4294966912  ;;  %p174_p4 = scmp.eq.s32.totalorder %s731_s12, 0  ;;  %v828_v0 = vld [vmem:[#allocation5] sm:$0xff]  ;;  %v830_v1 = vld [vmem:[#allocation5 + $0x8] sm:$0xff] }
  0x2e   : > { %v832_v2 = vld [vmem:[#allocation5 + $0x10] sm:$0xff]  ;;  %vm180_vm0 = vcmask (%p174_p4), 253952   ;;  %vm187_vm1 = vcmask (%p174_p4), 18432   ;;  %v744_v3 = vmov (%p174_p4), 0.0  }
  0x2f   : > { %179 = sbr.rel (!%p174_p4) target bundleno = 54 (0x36), region = 40  ;;  %181 = vst.msk [vmem:[#allocation2] sm:$0x1] (%p174_p4), %vm180_vm0, %v744_v3  ;;  %182 = vst.msk [vmem:[#allocation2 + $0x1] sm:$0x1] (%p174_p4), %vm180_vm0, %v744_v3 }
  0x30   : > { %183 = vst.msk [vmem:[#allocation2 + $0x2] sm:$0x1] (%p174_p4), %vm180_vm0, %v744_v3  ;;  %184 = vst.msk [vmem:[#allocation3] sm:$0x1] (%p174_p4), %vm180_vm0, %v744_v3 }
  0x31   : > { %185 = vst.msk [vmem:[#allocation3 + $0x1] sm:$0x1] (%p174_p4), %vm180_vm0, %v744_v3  ;;  %186 = vst.msk [vmem:[#allocation3 + $0x2] sm:$0x1] (%p174_p4), %vm180_vm0, %v744_v3 }
  0x32   : > { %188 = vst.msk [vmem:[#allocation4] sm:$0x7] (%p174_p4), %vm187_vm1, %v744_v3 }
  0x36 PF: > { %p586_p3 = scmp.ne.s32.totalorder %s731_s12, 0 }
  0x37   : > { %vm195_vm2 = vcmask (!%p586_p3), 261120   ;;  %v227_v4 = vmul.f32 (!%p586_p3), %v828_v0, %v828_v0  ;;  %v228_v5 = vmul.f32 (!%p586_p3), %v830_v1, %v830_v1  ;;  %v229_v9 = vmul.f32 (!%p586_p3), %v832_v2, %v832_v2  ;;  %v192_v34 = vld [vmem:[#allocation2] sm:$0x1] (!%p586_p3)  ;;  %v193_v39 = vld [vmem:[#allocation2 + $0x1] sm:$0x1] (!%p586_p3) }
  0x38   : > { %191 = sbr.rel (%p586_p3) target bundleno = 75 (0x4b), region = 44  ;;  %v196_v6 = vsel (!%p586_p3), %vm195_vm2, %v828_v0, 0.0  ;;  %v203_v7 = vsel (!%p586_p3), %vm195_vm2, %v830_v1, 0.0  ;;  %v210_v8 = vsel (!%p586_p3), %vm195_vm2, %v832_v2, 0.0  ;;  %v194_v40 = vld [vmem:[#allocation2 + $0x2] sm:$0x1] (!%p586_p3) }
  0x39   : > { %v197_v10 = vrot.slane (!%p586_p3), %v196_v6, 4  ;;  %v204_v11 = vrot.slane (!%p586_p3), %v203_v7, 4  ;;  %v211_v12 = vrot.slane (!%p586_p3), %v210_v8, 4  ;;  %v230_v13 = vsel (!%p586_p3), %vm195_vm2, %v227_v4, 0.0  ;;  %v224_v46 = vld [vmem:[#allocation3] sm:$0x1] (!%p586_p3) }
  0x3a   : > { %v231_v14 = vrot.slane (!%p586_p3), %v230_v13, 4  ;;  %v237_v15 = vsel (!%p586_p3), %vm195_vm2, %v228_v5, 0.0  ;;  %v244_v21 = vsel (!%p586_p3), %vm195_vm2, %v229_v9, 0.0  ;;  %vm220_vm3 = vcmask (!%p586_p3), 253952   ;;  %v225_v49 = vld [vmem:[#allocation3 + $0x1] sm:$0x1] (!%p586_p3) }
  0x3b   : > { %v198_v16 = vadd.f32 (!%p586_p3), %v197_v10, %v196_v6  ;;  %v205_v17 = vadd.f32 (!%p586_p3), %v204_v11, %v203_v7  ;;  %v212_v18 = vadd.f32 (!%p586_p3), %v211_v12, %v210_v8  ;;  %v238_v19 = vrot.slane (!%p586_p3), %v237_v15, 4  ;;  %v226_v58 = vld [vmem:[#allocation3 + $0x2] sm:$0x1] (!%p586_p3) }
  0x3c   : > { %v232_v20 = vadd.f32 (!%p586_p3), %v231_v14, %v230_v13  ;;  %v245_v27 = vrot.slane (!%p586_p3), %v244_v21, 4 }
  0x3d   : > { %v199_v22 = vrot.slane (!%p586_p3), %v198_v16, 2  ;;  %v206_v23 = vrot.slane (!%p586_p3), %v205_v17, 2  ;;  %v213_v24 = vrot.slane (!%p586_p3), %v212_v18, 2  ;;  %v239_v25 = vadd.f32 (!%p586_p3), %v238_v19, %v237_v15 }
  0x3e   : > { %v233_v26 = vrot.slane (!%p586_p3), %v232_v20, 2  ;;  %v246_v33 = vadd.f32 (!%p586_p3), %v245_v27, %v244_v21 }
  0x3f   : > { %v200_v28 = vadd.f32 %v199_v22, %v198_v16  ;;  %v207_v29 = vadd.f32 %v206_v23, %v205_v17  ;;  %v214_v30 = vadd.f32 %v213_v24, %v212_v18  ;;  %v240_v31 = vrot.slane %v239_v25, 2 }
  0x40   : > { %v234_v32 = vadd.f32 %v233_v26, %v232_v20  ;;  %v247_v42 = vrot.slane %v246_v33, 2 }
  0x41   : > { %v201_v35 = vrot.slane %v200_v28, 1  ;;  %v208_v36 = vrot.slane %v207_v29, 1  ;;  %v215_v37 = vrot.slane %v214_v30, 1  ;;  %v241_v38 = vadd.f32 %v240_v31, %v239_v25 }
  0x42   : > { %v235_v41 = vrot.slane %v234_v32, 1  ;;  %v248_v50 = vadd.f32 %v247_v42, %v246_v33 }
  0x43   : > { %v202_v43 = vadd.f32 %v201_v35, %v200_v28  ;;  %v209_v44 = vadd.f32 %v208_v36, %v207_v29  ;;  %v216_v45 = vadd.f32 %v215_v37, %v214_v30  ;;  %v242_v47 = vrot.slane %v241_v38, 1 }
  0x44   : > { %v236_v48 = vadd.f32 %v235_v41, %v234_v32  ;;  %v249_v56 = vrot.slane %v248_v50, 1 }
  0x45   : > { %v217_v51 = vadd.f32 %v202_v43, %v192_v34  ;;  %v218_v52 = vadd.f32 %v209_v44, %v193_v39  ;;  %v219_v53 = vadd.f32 %v216_v45, %v194_v40  ;;  %v243_v54 = vadd.f32 %v242_v47, %v241_v38 }
  0x46   : > { %v251_v55 = vadd.f32 %v236_v48, %v224_v46  ;;  %v250_v59 = vadd.f32 %v249_v56, %v248_v50 }
  0x47   : > { %221 = vst.msk [vmem:[#allocation2] sm:$0x1] %vm220_vm3, %v217_v51  ;;  %222 = vst.msk [vmem:[#allocation2 + $0x1] sm:$0x1] %vm220_vm3, %v218_v52  ;;  %v252_v57 = vadd.f32 %v243_v54, %v225_v49 }
  0x48   : > { %223 = vst.msk [vmem:[#allocation2 + $0x2] sm:$0x1] %vm220_vm3, %v219_v53  ;;  %254 = vst.msk [vmem:[#allocation3] sm:$0x1] %vm220_vm3, %v251_v55  ;;  %v253_v60 = vadd.f32 %v250_v59, %v226_v58 }
  0x49   : > { %255 = vst.msk [vmem:[#allocation3 + $0x1] sm:$0x1] %vm220_vm3, %v252_v57 }
  0x4a   : > { %256 = vst.msk [vmem:[#allocation3 + $0x2] sm:$0x1] %vm220_vm3, %v253_v60 }
  0x4b PF: > { %p257_p6 = scmp.eq.s32.totalorder %s731_s12, 1  ;;  %p587_p8 = scmp.ne.s32.totalorder %s731_s12, 1 }
  0x4c   : > { %v293_v15 = vlaneseq (!%p587_p8)  ;;  %v288_v28 = vld [vmem:[%s935_s1] sm:$0x1] (!%p587_p8)  ;;  %vm347_vm4 = vcmask (!%p587_p8), 261120   ;;  %vm428_vm5 = vcmask (!%p587_p8), 1041409   ;;  %vm430_vm6 = vcmask (!%p587_p8), 1042434  }
  0x4d   : > { %260 = sbr.rel (%p587_p8) target bundleno = 729 (0x2d9), region = 48  ;;  %v588_v39 = vld [vmem:[%s936_s2] ss:$0 sm:$0xff] (!%p587_p8)  ;;  %vm439_vm7 = vcmask (!%p587_p8), 59392   ;;  %vm471_vm9 = vcmask (!%p587_p8), 18432  }
  0x4e   : > { %v261_v4 = vld [vmem:[#allocation2] sm:$0x1] (!%p587_p8)  ;;  %v262_v9 = vld [vmem:[#allocation2 + $0x1] sm:$0x1] (!%p587_p8)  ;;  %v859_v22 = vshrl.u32 (!%p587_p8), %v293_v15, 7 }
  0x4f   : > { %v263_v61 = vld [vmem:[#allocation2 + $0x2] sm:$0x1] (!%p587_p8)  ;;  %v267_v5 = vld [vmem:[#allocation3] sm:$0x1] (!%p587_p8)  ;;  %v264_v7 = vmul.f32 (!%p587_p8), 0.125, %v261_v4  ;;  %v265_v11 = vmul.f32 (!%p587_p8), 0.125, %v262_v9 }
  0x50   : > { %v266_v63 = vmul.f32 (!%p587_p8), 0.125, %v263_v61  ;;  %v270_v8 = vmul.f32 (!%p587_p8), 0.125, %v267_v5  ;;  %v268_v10 = vld [vmem:[#allocation3 + $0x1] sm:$0x1] (!%p587_p8)  ;;  %v295_v26 = vsub.s32 (!%p587_p8), 0, %v859_v22 }
  0x51   : > { %v269_v62 = vld [vmem:[#allocation3 + $0x2] sm:$0x1] (!%p587_p8)  ;;  %v271_v12 = vmul.f32 (!%p587_p8), 0.125, %v268_v10  ;;  %v273_v14 = vmul.f32 (!%p587_p8), %v264_v7, %v264_v7  ;;  %v274_v16 = vmul.f32 (!%p587_p8), %v265_v11, %v265_v11 }
  0x52   : > { %v272_v3 = vmul.f32 (!%p587_p8), 0.125, %v269_v62  ;;  %v275_v6 = vmul.f32 (!%p587_p8), %v266_v63, %v266_v63  ;;  %v304_v27 = vrot.slane (!%p587_p8), %v266_v63, %v295_v26  ;;  %v296_v29 = vrot.slane (!%p587_p8), %v264_v7, %v295_v26 }
  0x53   : > { %v276_v18 = vsub.f32 (!%p587_p8), %v270_v8, %v273_v14  ;;  %v277_v19 = vsub.f32 (!%p587_p8), %v271_v12, %v274_v16  ;;  %v300_v31 = vrot.slane (!%p587_p8), %v265_v11, %v295_v26 }
  0x54   : > { %v278_v13 = vsub.f32 %v272_v3, %v275_v6  ;;  %v310_v32 = vsub.f32 %v832_v2, %v304_v27  ;;  %v308_v37 = vsub.f32 %v828_v0, %v296_v29 }
  0x55   : > { %v279_v21 = vmax.f32 %v276_v18, 0.0  ;;  %v280_v23 = vmax.f32 %v277_v19, 0.0  ;;  %v309_v40 = vsub.f32 %v830_v1, %v300_v31  ;;  %v403_v18 = vand.u32 127, %v293_v15 }
  0x56   : > { %v281_v17 = vmax.f32 %v278_v13, 0.0 }
  0x57   : > { %v282_v24 = vadd.f32 1e-05, %v279_v21  ;;  %v283_v25 = vadd.f32 1e-05, %v280_v23  ;;  %vm451_vm8 = vcmp.eq.s32.totalorder %v859_v22, %v403_v18 }
  0x58   : > { %v284_v20 = vadd.f32 1e-05, %v281_v17 }
  0x5a   : > { %641 = vrsqrt.f32 %v284_v20 }
  0x5b   : > { %643 = vrsqrt.f32 %v282_v24  ;;  %v406_v24 = vsub.s32 %v403_v18, %v859_v22 }
  0x5c   : > { %645 = vrsqrt.f32 %v283_v25 }
  0x64   : > { %v642_v30 = vpop.eup %641 }
  0x65   : > { %v313_v33 = vmul.f32 %v642_v30, %v288_v28  ;;  %v644_v34 = vpop.eup %643 }
  0x66   : > { %v646_v35 = vpop.eup %645  ;;  %v311_v38 = vmul.f32 %v644_v34, %v288_v28 }
  0x67   : > { %v328_v36 = vrot.slane %v313_v33, %v295_v26  ;;  %v312_v41 = vmul.f32 %v646_v35, %v288_v28 }
  0x68   : > { %v320_v43 = vrot.slane %v311_v38, %v295_v26 }
  0x69   : > { %v334_v42 = vmul.f32 %v328_v36, %v310_v32  ;;  %v324_v44 = vrot.slane %v312_v41, %v295_v26 }
  0x6a   : > { %v332_v46 = vmul.f32 %v320_v43, %v308_v37 }
  0x6b   : > { %v343_v45 = vadd.f32 %v588_v39, %v334_v42  ;;  %v333_v2 = vmul.f32 %v324_v44, %v309_v40 }
  0x6c   : > { %v341_v48 = vadd.f32 %v588_v39, %v332_v46 }
  0x6d   : > { %v346_v47 = vmul.f32 %v343_v45, %v343_v45  ;;  %v342_v49 = vadd.f32 %v588_v39, %v333_v2 }
  0x6e   : > { %v344_v50 = vmul.f32 %v341_v48, %v341_v48 }
  0x6f   : > { %v354_v0 = vsel %vm347_vm4, %v346_v47, 0.0  ;;  %v345_v51 = vmul.f32 %v342_v49, %v342_v49 }
  0x70   : > { %355 = vadd.xlane.f32.xlu1 %v354_v0  ;;  %v348_v52 = vsel %vm347_vm4, %v344_v50, 0.0 }
  0x71   : > { %349 = vadd.xlane.f32.xlu0 %v348_v52  ;;  %v351_v1 = vsel %vm347_vm4, %v345_v51, 0.0 }
  0x75   : > { %352 = vadd.xlane.f32.xlu0 %v351_v1 }
  0xfd   : > { %v356_v53 = vpop.xlane.xlu1 %355 }
  0xfe   : > { %v350_v54 = vpop.xlane.xlu0 %349  ;;  %v359_v55 = vmax.f32 %v356_v53, 1e-24 }
  0xff   : > { %v357_v56 = vmax.f32 %v350_v54, 1e-24 }
 0x101   : > { %647 = vrsqrt.f32 %v357_v56 }
 0x102   : > { %v353_v57 = vpop.xlane.xlu0 %352  ;;  %649 = vrsqrt.f32 %v359_v55 }
 0x103   : > { %v358_v58 = vmax.f32 %v353_v57, 1e-24 }
 0x105   : > { %651 = vrsqrt.f32 %v358_v58 }
 0x10b   : > { %v648_v59 = vpop.eup %647 }
 0x10c   : > { %v363_v60 = vmul.f32 %v648_v59, %v341_v48  ;;  %v650_v61 = vpop.eup %649 }
 0x10d   : > { %v365_v5 = vmul.f32 %v650_v61, %v343_v45 }
 0x10e   : > { %v366_v62 = vmul.f32 %v363_v60, %v363_v60 }
 0x10f   : > { %v652_v63 = vpop.eup %651  ;;  %v368_v11 = vmul.f32 %v365_v5, %v363_v60  ;;  %v371_v14 = vmul.f32 %v365_v5, %v365_v5 }
 0x110   : > { %v372_v3 = vsel %vm347_vm4, %v366_v62, 0.0  ;;  %v364_v4 = vmul.f32 %v652_v63, %v342_v49 }
 0x111   : > { %373 = vadd.xlane.f32.xlu1 %v372_v3  ;;  %v378_v13 = vsel %vm347_vm4, %v368_v11, 0.0  ;;  %v387_v16 = vsel %vm347_vm4, %v371_v14, 0.0 }
 0x112   : > { %v369_v6 = vmul.f32 %v364_v4, %v364_v4  ;;  %v367_v7 = vmul.f32 %v364_v4, %v363_v60  ;;  %v370_v10 = vmul.f32 %v365_v5, %v364_v4 }
 0x114   : > { %v381_v8 = vsel %vm347_vm4, %v369_v6, 0.0  ;;  %v375_v9 = vsel %vm347_vm4, %v367_v7, 0.0  ;;  %v384_v12 = vsel %vm347_vm4, %v370_v10, 0.0  ;;  %v481_v7 = vld [vmem:[#allocation4] sm:$0x7] }
 0x115   : > { %382 = vadd.xlane.f32.xlu1 %v381_v8  ;;  %376 = vadd.xlane.f32.xlu0 %v375_v9 }
 0x119   : > { %385 = vadd.xlane.f32.xlu1 %v384_v12  ;;  %379 = vadd.xlane.f32.xlu0 %v378_v13 }
 0x11d   : > { %388 = vadd.xlane.f32.xlu0 %v387_v16 }
 0x19e   : > { %v374_v17 = vpop.xlane.xlu1 %373 }
 0x19f   : > { %v390_v25 = vmul.f32 %v374_v17, %v374_v17 }
 0x1a1   : > { %v407_v32 = vrot.slane %v390_v25, %v406_v24 }
 0x1a2   : > { %v383_v19 = vpop.xlane.xlu1 %382  ;;  %v377_v20 = vpop.xlane.xlu0 %376 }
 0x1a3   : > { %v393_v21 = vmul.f32 %v383_v19, %v383_v19  ;;  %v391_v23 = vmul.f32 %v377_v20, %v377_v20 }
 0x1a5   : > { %v419_v26 = vrot.slane %v393_v21, %v406_v24  ;;  %v411_v27 = vrot.slane %v391_v23, %v406_v24 }
 0x1a6   : > { %v386_v28 = vpop.xlane.xlu1 %385  ;;  %v380_v29 = vpop.xlane.xlu0 %379 }
 0x1a7   : > { %v394_v30 = vmul.f32 %v386_v28, %v386_v28  ;;  %v392_v31 = vmul.f32 %v380_v29, %v380_v29  ;;  %v432_v35 = vsel %vm428_vm5, %v419_v26, %v411_v27  ;;  %v429_v36 = vsel %vm428_vm5, %v411_v27, %v407_v32 }
 0x1a9   : > { %v423_v33 = vrot.slane %v394_v30, %v406_v24  ;;  %v415_v34 = vrot.slane %v392_v31, %v406_v24 }
 0x1aa   : > { %v389_v15 = vpop.xlane.xlu0 %388 }
 0x1ab   : > { %v395_v37 = vmul.f32 %v389_v15, %v389_v15  ;;  %v433_v38 = vsel %vm430_vm6, %v423_v33, %v432_v35  ;;  %v431_v39 = vsel %vm430_vm6, %v415_v34, %v429_v36  ;;  %v434_v43 = vsel %vm428_vm5, %v423_v33, %v415_v34 }
 0x1ac   : > { %v443_v40 = vsel %vm439_vm7, %v433_v38, 0.0  ;;  %v440_v41 = vsel %vm439_vm7, %v431_v39, 0.0 }
 0x1ad   : > { %v427_v42 = vrot.slane %v395_v37, %v406_v24  ;;  %444 = vadd.xlane.f32.xlu0 %v443_v40  ;;  %441 = vadd.xlane.f32.xlu1 %v440_v41 }
 0x1af   : > { %v435_v44 = vsel %vm430_vm6, %v427_v42, %v434_v43 }
 0x1b0   : > { %v446_v45 = vsel %vm439_vm7, %v435_v44, 0.0 }
 0x1b1   : > { %447 = vadd.xlane.f32.xlu1 %v446_v45 }
 0x23a   : > { %v442_v46 = vpop.xlane.xlu1 %441  ;;  %v445_v2 = vpop.xlane.xlu0 %444 }
 0x23b   : > { %v483_v47 = vmul.f32 2.0, %v442_v46  ;;  %v484_v48 = vmul.f32 2.0, %v445_v2  ;;  %v458_v49 = vrot.slane %v442_v46, %v406_v24  ;;  %v462_v0 = vrot.slane %v445_v2, %v406_v24 }
 0x23d   : > { %v492_v50 = vrot.slane %v483_v47, %v406_v24  ;;  %v496_v51 = vrot.slane %v484_v48, %v406_v24  ;;  %v467_v54 = vsel %vm428_vm5, %v462_v0, %v458_v49 }
 0x23e   : > { %v448_v52 = vpop.xlane.xlu1 %447 }
 0x23f   : > { %v466_v1 = vrot.slane %v448_v52, %v406_v24  ;;  %v485_v53 = vmul.f32 2.0, %v448_v52  ;;  %v501_v58 = vsel %vm428_vm5, %v496_v51, %v492_v50 }
 0x241   : > { %v500_v55 = vrot.slane %v485_v53, %v406_v24  ;;  %v468_v56 = vsel %vm430_vm6, %v466_v1, %v467_v54 }
 0x242   : > { %v470_v57 = vsel %vm451_vm8, %v468_v56, 0.0 }
 0x243   : > { %v472_v59 = vsel %vm471_vm9, %v470_v57, 0.0  ;;  %v502_v60 = vsel %vm430_vm6, %v500_v55, %v501_v58 }
 0x244   : > { %473 = vadd.xlane.f32.xlu0 %v472_v59  ;;  %v475_v61 = vrot.slane %v472_v59, 4 }
 0x246   : > { %v476_v62 = vadd.f32 %v475_v61, %v472_v59 }
 0x248   : > { %v477_v63 = vrot.slane %v476_v62, 2 }
 0x24a   : > { %v478_v3 = vadd.f32 %v477_v63, %v476_v62 }
 0x24c   : > { %v479_v4 = vrot.slane %v478_v3, 1 }
 0x24e   : > { %v480_v22 = vadd.f32 %v479_v4, %v478_v3 }
 0x2d1   : > { %v474_v5 = vpop.xlane.xlu0 %473 }
 0x2d2   : > { %v482_v6 = vadd.f32 %v480_v22, %v474_v5 }
 0x2d4   : > { %v504_v8 = vsub.f32 %v482_v6, %v502_v60 }
 0x2d6   : > { %v505_v9 = vadd.f32 %v504_v8, %v481_v7 }
 0x2d8   : > { %506 = vst.msk [vmem:[#allocation4] sm:$0x7] %vm471_vm9, %v505_v9 }
 0x2d9 PF: > { %510 = sbr.rel (!%p257_p6) target bundleno = 756 (0x2f4), region = 52  ;;  %vm521_vm12 = vcmask (%p257_p6), 18432  }
 0x2df   : > { %v511_v10 = vld [vmem:[#allocation4] sm:$0x7] (%p257_p6) }
 0x2e0   : > { %v512_v11 = vmax.f32 %v511_v10, 0.0 }
 0x2e2   : > { %v513_v12 = vadd.f32 1e-09, %v512_v11 }
 0x2e4   : > { %653 = vrsqrt.f32 %v513_v12  ;;  %vm516_vm10 = vcmp.eq.f32.partialorder %v513_v12, inf  ;;  %v519_v14 = vand.u32 2147483648, %v513_v12  ;;  %vm518_vm11 = vcmp.eq.f32.partialorder %v513_v12, 0.0 }
 0x2ee   : > { %v654_v13 = vpop.eup %653 }
 0x2ef   : > { %v515_v16 = vmul.f32 %v654_v13, %v513_v12 }
 0x2f1   : > { %v517_v17 = vsel %vm516_vm10, %v513_v12, %v515_v16 }
 0x2f2   : > { %v520_v18 = vsel %vm518_vm11, %v519_v14, %v517_v17 }
 0x2f3   : > { %522 = vst.msk [vmem:[#allocation8] sm:$0x7] %vm521_vm12, %v520_v18 }
 0x2f4 PF: > { %p899_p10 = scmp.eq.s32.totalorder %s580_s15, 1  ;;  %s745_s12 = smov [#allocation8]  }
 0x2f5   : > { %s530_s17 = sshll.u32 %s745_s12, 4  ;;  %s531_s17 = int_to_ptr.vmem [resolvable:$true] %s530_s17 }
 0x2f6   : > { %s683_s18 = scalar_lea.vmem %s531_s17, 64  ;;  %p690_p0 = scmp.lt.s32.totalorder %s531_s17, %s531_s17 }
 0x2f7   : > { %p684_p11 = scmp.ne.s32.totalorder %s531_s17, %s683_s18  ;;  %p691_p1 = scmp.lt.s32.totalorder %s683_s18, %s683_s18 }
 0x2f9   : > { %p685_p12 = pnand %p684_p11, %p899_p10  ;;  %p692_p2 = por %p691_p1, %p690_p0 }
 0x2fb   : > { %p686_p13 = pneg %p685_p12 }
 0x2fd   : > { %p693_p5 = pnand %p692_p2, %p686_p13 }
 0x2ff   : > { %696 = shalt.err (!%p693_p5)
}
 0x300   : > { %s697_s15 = scalar_lea.hbm %s937_s3, 64 }
 0x301   : > { %p698_p7 = scmp.ne.s32.totalorder %s937_s3, %s697_s15  ;;  %p703_p3 = scmp.lt.u32.totalorder %s697_s15, %s937_s3 }
 0x303   : > { %p699_p9 = pnand %p698_p7, %p899_p10 }
 0x305   : > { %p700_p4 = pneg %p699_p9 }
 0x307   : > { %p705_p6 = pnand %p703_p3, %p700_p4 }
 0x309   : > { %708 = shalt.err (!%p705_p6)
}
 0x30a   : > { %601 = dma.vmem_to_hbm [thread:$0]  (%p899_p10), %s531_s17, 64, %s937_s3, [#allocation7]  }
 0x30b   : > { %726 = dma.done.wait (%p899_p10), [#allocation7], 64  }
 0x30c   : > { %728 = vsyncadd (%p899_p10), [#allocation7], 4294967232 }
 0x30d PF: > { %s15_s14 = sadd.s32 1, %s739_s14   ;;  %s947_s12 = smov %s735_s13 }
 0x30e   : > { %p12_p8 = scmp.ge.s32.totalorder %s15_s14, 4   ;;  %s948_s13 = smov %s950_s16 }
 0x310   :  { %14 = sbr.rel (!%p12_p8) target bundleno = 3 (0x3), region = 78 }
 0x317   :  { %543 = vsyncpa [#allocation6], 1 }
 0x318   :  { %545 = vsyncpa [#allocation6 + $0x1], 1 }
 0x319   :  { %546 = vsyncpa [#allocation7], 1 }
 0x31a   :  { %548 = vsyncpa [#allocation7 + $0x1], 1 }

</bundles_post_ra>
